<compile_context>
chip_gen: v7x
topology: tpu7x:2x2x1
jax: 0.10.0
libtpu: 0.0.40
codegen_flags: <defaults>
</compile_context>

<pallas_src>
import functools

import jax
import jax.numpy as jnp
from jax.experimental import pallas as pl
from jax.experimental.pallas import tpu as pltpu

_LANE = 128          # vreg lane width (last dim)
_SUBLANE_F32 = 8     # f32 sublane tile
_SUBLANE_BF16 = 16   # bf16 packs two rows per sublane
_MIB = 1024 * 1024


def _round_up(x, m):
    return ((x + m - 1) // m) * m


def _probe_buffered():
    """One-time probe: does this jax build accept pipeline_mode=pl.Buffered(1)?"""
    try:
        pl.BlockSpec((8, 128), lambda i: (0, 0), pipeline_mode=pl.Buffered(1))
        return True
    except (AttributeError, TypeError):
        return False


_HAS_BUFFERED = _probe_buffered()


def _mlp_kernel(*refs, num_layers, use_bf16):
    """Fused MLP body: refs = (x, w0, b0, w1, b1, ..., w_{L-1}, b_{L-1}, out).

    ReLU after every layer except the last (final_activation_function=None).
    MXU matmuls (bf16 inputs when use_bf16) with f32 accumulation; bias add
    and ReLU in f32.
    """
    x_ref = refs[0]
    out_ref = refs[-1]
    param_refs = refs[1:-1]

    h = x_ref[...]
    for layer in range(num_layers):
        w_ref = param_refs[2 * layer]
        b_ref = param_refs[2 * layer + 1]
        lhs = h.astype(jnp.bfloat16) if use_bf16 else h.astype(jnp.float32)
        h = jnp.dot(lhs, w_ref[...], preferred_element_type=jnp.float32)
        h = h + b_ref[...]
        if layer < num_layers - 1:  # ReLU on all but the final layer
            h = jnp.maximum(h, 0.0)
    out_ref[...] = h.astype(out_ref.dtype)


class PallasMLP:
    """Fused-MLP forward with weights prepared (padded/transposed/cast) once."""

    def __init__(self, weights, biases, *, use_bf16=True, batch_tile=512,
                 out_dtype=jnp.float32):
        assert len(weights) == len(biases) and len(weights) >= 1
        self.num_layers = len(weights)
        self.use_bf16 = use_bf16
        self.batch_tile = int(batch_tile)
        self.out_dtype = jnp.dtype(out_dtype)

        self.in_dims = int(weights[0].shape[1])
        self.out_dims = int(weights[-1].shape[0])

        # Feature dims: keep the raw in_dims as the first matmul's K (legal as
        # a full-array block, so x never needs a feature-padding pass); pad all
        # layer OUTPUT dims to 128-lane multiples so intermediate tiles and the
        # output store are lane-dense, unmasked vst's.  Padding is exact:
        # padded weight rows/cols and bias lanes are zero and ReLU(0) = 0.
        dims = [self.in_dims] + [int(w.shape[0]) for w in weights]
        pdims = [self.in_dims] + [_round_up(d, _LANE) for d in dims[1:]]
        self.dims, self.pdims = dims, pdims

        wdtype = jnp.bfloat16 if use_bf16 else jnp.float32
        params = []
        for l, (w, b) in enumerate(zip(weights, biases)):
            fin, fout = dims[l], dims[l + 1]
            pfin, pfout = pdims[l], pdims[l + 1]
            # PyTorch (out,in) -> (in,out) so the hot loop is a plain x @ W.
            wt = (jnp.zeros((pfin, pfout), jnp.float32)
                  .at[:fin, :fout].set(jnp.asarray(w, jnp.float32).T)
                  .astype(wdtype))
            bp = (jnp.zeros((1, pfout), jnp.float32)
                  .at[0, :fout].set(jnp.asarray(b, jnp.float32)))
            params.extend([wt, bp])
        # Materialize once on device; every forward call reuses these buffers.
        self.params = [jax.device_put(p) for p in params]

        self._kernel = functools.partial(
            _mlp_kernel, num_layers=self.num_layers, use_bf16=use_bf16)

    # ------------------------------------------------------------------ utils
    def _choose_tile(self, B):
        sub = _SUBLANE_BF16 if self.use_bf16 else _SUBLANE_F32
        tile = _round_up(max(min(self.batch_tile, B), sub), sub)
        # Aim for >= ~4 grid steps per TensorCore on 2-core parts (8 total) so
        # the x-tile DMA / y writeback overlap compute; never drop below 2*sub.
        min_tile = 2 * sub
        while tile > min_tile and -(-B // tile) < 8:
            tile = max(min_tile, _round_up(tile // 2, sub))
        return tile

    def _vmem_limit(self, tile, k0, out_pad, x_itemsize):
        weight_bytes = sum(int(p.size) * p.dtype.itemsize for p in self.params)
        in_buf = 2 * tile * k0 * x_itemsize                    # 2x x tiles
        out_buf = 2 * tile * out_pad * self.out_dtype.itemsize  # 2x y tiles
        act = 2 * tile * max(self.pdims) * 4                    # f32 h + dot tmp
        need = int((weight_bytes + in_buf + out_buf + act) * 1.25) + 4 * _MIB
        try:
            cap = int(pltpu.get_tpu_info().vmem_capacity_bytes)
        except (AttributeError, RuntimeError, NotImplementedError, ValueError):
            cap = 64 * _MIB  # conservative: v7x has the smallest per-TC VMEM
        return max(16 * _MIB, min(need, int(cap * 0.85)))

    # ---------------------------------------------------------------- forward
    def __call__(self, x, *, return_padded=False):
        assert x.ndim == 2 and x.shape[1] == self.in_dims
        B = int(x.shape[0])
        tile = self._choose_tile(B)
        Bp = _round_up(B, tile)

        # Batch padding only when needed; no feature padding and no wrapper
        # bf16 cast (cast happens in-kernel), so x streams from HBM once.
        if Bp != B:
            x_in = jnp.zeros((Bp, self.in_dims), x.dtype).at[:B].set(x)
        else:
            x_in = x

        k0 = self.pdims[0]
        out_pad = self.pdims[-1]
        grid = (Bp // tile,)

        in_specs = [pl.BlockSpec((tile, k0), lambda i: (i, 0))]
        for p in self.params:
            if _HAS_BUFFERED:
                # Constant block index -> multi-buffering only wastes VMEM.
                in_specs.append(pl.BlockSpec(p.shape, lambda i: (0, 0),
                                             pipeline_mode=pl.Buffered(1)))
            else:
                in_specs.append(pl.BlockSpec(p.shape, lambda i: (0, 0)))
        out_specs = pl.BlockSpec((tile, out_pad), lambda i: (i, 0))

        flops = 2 * Bp * sum(self.pdims[l] * self.pdims[l + 1]
                             for l in range(self.num_layers))
        bytes_accessed = (int(x_in.size) * x_in.dtype.itemsize
                          + sum(int(p.size) * p.dtype.itemsize
                                for p in self.params)
                          + Bp * out_pad * self.out_dtype.itemsize)
        cost = pl.CostEstimate(flops=int(flops), transcendentals=0,
                               bytes_accessed=int(bytes_accessed))

        vmem_limit = self._vmem_limit(tile, k0, out_pad, x_in.dtype.itemsize)

        # TODO(synk): for hidden dims >= ~4K bf16 (weights no longer VMEM-
        # resident, especially on 64 MiB v7x), switch to a (batch, N, K) grid
        # with an f32 VMEM accumulator (pl.when init/finalize) and ping-pong
        # VMEM scratch for the inter-layer activation instead of full-array
        # resident weight blocks.
        y_p = pl.pallas_call(
            self._kernel,
            out_shape=jax.ShapeDtypeStruct((Bp, out_pad), self.out_dtype),
            grid=grid,
            in_specs=in_specs,
            out_specs=out_specs,
            compiler_params=pltpu.CompilerParams(
                dimension_semantics=("parallel",),
                vmem_limit_bytes=vmem_limit,
            ),
            cost_estimate=cost,
        )(x_in, *self.params)

        if return_padded:
            return y_p
        return y_p[:B, :self.out_dims]


# --------------------------------------------------------------------- helpers
def init_mlp_params(key, in_dims, out_dims, layers):
    """nn.Linear-style U(-1/sqrt(fan_in), 1/sqrt(fan_in)) init, PyTorch layout."""
    fan_ins = [in_dims] + layers
    fan_outs = layers + [out_dims]
    weights, biases = [], []
    for fin, fout in zip(fan_ins, fan_outs):
        key, kw, kb = jax.random.split(key, 3)
        bound = 1.0 / float(fin) ** 0.5
        weights.append(jax.random.uniform(kw, (fout, fin), jnp.float32,
                                          -bound, bound))
        biases.append(jax.random.uniform(kb, (fout,), jnp.float32,
                                         -bound, bound))
    return weights, biases


def mlp_reference(x, weights, biases, *, use_bf16=True):
    """Pure-JAX reference of the same forward pass (same matmul precision)."""
    h = x
    n = len(weights)
    for i, (w, b) in enumerate(zip(weights, biases)):
        lhs = h.astype(jnp.bfloat16) if use_bf16 else h
        rhs = w.T.astype(jnp.bfloat16) if use_bf16 else w.T
        h = jnp.dot(lhs, rhs, preferred_element_type=jnp.float32) + b
        if i < n - 1:
            h = jnp.maximum(h, 0.0)
    return h


if __name__ == "__main__":
    # MLP(in_dims=16, out_dims=8, layers=[32, 64], final_activation_function=None)
    in_dims, out_dims, layers = 16, 8, [32, 64]

    key = jax.random.PRNGKey(0)
    key, kx1, kx2 = jax.random.split(key, 3)
    weights, biases = init_mlp_params(key, in_dims, out_dims, layers)

    # Prepare (pad/transpose/cast) the weights exactly once.
    mlp = PallasMLP(weights, biases, use_bf16=True, batch_tile=512,
                    out_dtype=jnp.float32)

    # Call 1: tile-aligned batch -> x is fed directly (no padding pass).
    batch1 = 64
    x1 = jax.random.normal(kx1, (batch1, in_dims), jnp.float32)
    y1 = jax.block_until_ready(mlp(x1))
    y1_ref = mlp_reference(x1, weights, biases, use_bf16=True)
    assert y1.shape == (batch1, out_dims)
    assert jnp.allclose(y1, y1_ref, atol=2e-3, rtol=2e-3), (
        f"mismatch (max abs err {float(jnp.max(jnp.abs(y1 - y1_ref)))})")

    # Call 2: non-aligned batch -> exercises the batch-padding path while
    # reusing the cached padded weights (no per-call weight re-prep).
    batch2 = 50
    x2 = jax.random.normal(kx2, (batch2, in_dims), jnp.float32)
    y2 = jax.block_until_ready(mlp(x2))
    y2_ref = mlp_reference(x2, weights, biases, use_bf16=True)
    assert y2.shape == (batch2, out_dims)
    assert jnp.allclose(y2, y2_ref, atol=2e-3, rtol=2e-3), (
        f"mismatch (max abs err {float(jnp.max(jnp.abs(y2 - y2_ref)))})")

    print("KERNEL_OK")
</pallas_src>

<mosaic_0001>
module attributes {stable_mosaic.version = 11 : i64} {
  func.func @_mlp_kernel(%arg0: i32, %arg1: memref<32x16xf32, #tpu.memory_space<vmem>>, %arg2: memref<16x128xbf16, #tpu.memory_space<vmem>>, %arg3: memref<1x128xf32, #tpu.memory_space<vmem>>, %arg4: memref<128x128xbf16, #tpu.memory_space<vmem>>, %arg5: memref<1x128xf32, #tpu.memory_space<vmem>>, %arg6: memref<128x128xbf16, #tpu.memory_space<vmem>>, %arg7: memref<1x128xf32, #tpu.memory_space<vmem>>, %arg8: memref<32x128xf32, #tpu.memory_space<vmem>>) attributes {dimension_semantics = [#tpu.dimension_semantics<parallel>], iteration_bounds = array<i64: 2>, scalar_prefetch = 0 : i64, scratch_operands = 0 : i64, tpu.core_type = #tpu.core_type<tc>, window_params = [{transform_indices = @transform_0, window_bounds = array<i64: 32, 16>}, {pipeline_mode = #tpu.pipeline_mode<synchronous>, transform_indices = @transform_1, window_bounds = array<i64: 16, 128>}, {pipeline_mode = #tpu.pipeline_mode<synchronous>, transform_indices = @transform_2, window_bounds = array<i64: 1, 128>}, {pipeline_mode = #tpu.pipeline_mode<synchronous>, transform_indices = @transform_3, window_bounds = array<i64: 128, 128>}, {pipeline_mode = #tpu.pipeline_mode<synchronous>, transform_indices = @transform_4, window_bounds = array<i64: 1, 128>}, {pipeline_mode = #tpu.pipeline_mode<synchronous>, transform_indices = @transform_5, window_bounds = array<i64: 128, 128>}, {pipeline_mode = #tpu.pipeline_mode<synchronous>, transform_indices = @transform_6, window_bounds = array<i64: 1, 128>}, {transform_indices = @transform_7, window_bounds = array<i64: 32, 128>}]} {
    %c0 = arith.constant 0 : index
    %c0_0 = arith.constant 0 : index
    %0 = vector.load %arg1[%c0, %c0_0] : memref<32x16xf32, #tpu.memory_space<vmem>>, vector<32x16xf32>
    %1 = arith.truncf %0 : vector<32x16xf32> to vector<32x16xbf16>
    %c0_1 = arith.constant 0 : index
    %c0_2 = arith.constant 0 : index
    %2 = vector.load %arg2[%c0_1, %c0_2] : memref<16x128xbf16, #tpu.memory_space<vmem>>, vector<16x128xbf16>
    %cst = arith.constant dense<0.000000e+00> : vector<32x128xf32>
    %3 = tpu.matmul %1, %2, %cst {dimension_numbers = #tpu.dot_dimension_numbers<[1], [0], [0], [1], [0, 0, 1, 1], [], []>} : vector<32x16xbf16>, vector<16x128xbf16>, vector<32x128xf32> -> vector<32x128xf32>
    %c0_3 = arith.constant 0 : index
    %c0_4 = arith.constant 0 : index
    %4 = vector.load %arg3[%c0_3, %c0_4] : memref<1x128xf32, #tpu.memory_space<vmem>>, vector<1x128xf32>
    %5 = vector.broadcast %4 : vector<1x128xf32> to vector<32x128xf32>
    %6 = arith.addf %3, %5 : vector<32x128xf32>
    %cst_5 = arith.constant 0.000000e+00 : f32
    %7 = vector.broadcast %cst_5 : f32 to vector<32x128xf32>
    %8 = arith.maximumf %6, %7 : vector<32x128xf32>
    %9 = arith.truncf %8 : vector<32x128xf32> to vector<32x128xbf16>
    %c0_6 = arith.constant 0 : index
    %c0_7 = arith.constant 0 : index
    %10 = vector.load %arg4[%c0_6, %c0_7] : memref<128x128xbf16, #tpu.memory_space<vmem>>, vector<128x128xbf16>
    %cst_8 = arith.constant dense<0.000000e+00> : vector<32x128xf32>
    %11 = tpu.matmul %9, %10, %cst_8 {dimension_numbers = #tpu.dot_dimension_numbers<[1], [0], [0], [1], [0, 0, 1, 1], [], []>} : vector<32x128xbf16>, vector<128x128xbf16>, vector<32x128xf32> -> vector<32x128xf32>
    %c0_9 = arith.constant 0 : index
    %c0_10 = arith.constant 0 : index
    %12 = vector.load %arg5[%c0_9, %c0_10] : memref<1x128xf32, #tpu.memory_space<vmem>>, vector<1x128xf32>
    %13 = vector.broadcast %12 : vector<1x128xf32> to vector<32x128xf32>
    %14 = arith.addf %11, %13 : vector<32x128xf32>
    %cst_11 = arith.constant 0.000000e+00 : f32
    %15 = vector.broadcast %cst_11 : f32 to vector<32x128xf32>
    %16 = arith.maximumf %14, %15 : vector<32x128xf32>
    %17 = arith.truncf %16 : vector<32x128xf32> to vector<32x128xbf16>
    %c0_12 = arith.constant 0 : index
    %c0_13 = arith.constant 0 : index
    %18 = vector.load %arg6[%c0_12, %c0_13] : memref<128x128xbf16, #tpu.memory_space<vmem>>, vector<128x128xbf16>
    %cst_14 = arith.constant dense<0.000000e+00> : vector<32x128xf32>
    %19 = tpu.matmul %17, %18, %cst_14 {dimension_numbers = #tpu.dot_dimension_numbers<[1], [0], [0], [1], [0, 0, 1, 1], [], []>} : vector<32x128xbf16>, vector<128x128xbf16>, vector<32x128xf32> -> vector<32x128xf32>
    %c0_15 = arith.constant 0 : index
    %c0_16 = arith.constant 0 : index
    %20 = vector.load %arg7[%c0_15, %c0_16] : memref<1x128xf32, #tpu.memory_space<vmem>>, vector<1x128xf32>
    %21 = vector.broadcast %20 : vector<1x128xf32> to vector<32x128xf32>
    %22 = arith.addf %19, %21 : vector<32x128xf32>
    %c0_17 = arith.constant 0 : index
    %c0_18 = arith.constant 0 : index
    %23 = vector.load %arg8[%c0_17, %c0_18] : memref<32x128xf32, #tpu.memory_space<vmem>>, vector<32x128xf32>
    tpu.vector_store %arg8[%c0_17, %c0_18], %22 {strides = array<i32>} : memref<32x128xf32, #tpu.memory_space<vmem>>, vector<32x128xf32>,
    return
  }
  func.func @transform_0(%arg0: i32) -> (i32, i32) {
    %c0_i32 = arith.constant 0 : i32
    %c0_i32_0 = arith.constant 0 : i32
    return %arg0, %c0_i32 : i32, i32
  }
  func.func @transform_1(%arg0: i32) -> (i32, i32) {
    %c0_i32 = arith.constant 0 : i32
    %c0_i32_0 = arith.constant 0 : i32
    %c0_i32_1 = arith.constant 0 : i32
    return %c0_i32, %c0_i32_0 : i32, i32
  }
  func.func @transform_2(%arg0: i32) -> (i32, i32) {
    %c0_i32 = arith.constant 0 : i32
    %c0_i32_0 = arith.constant 0 : i32
    %c0_i32_1 = arith.constant 0 : i32
    return %c0_i32, %c0_i32_0 : i32, i32
  }
  func.func @transform_3(%arg0: i32) -> (i32, i32) {
    %c0_i32 = arith.constant 0 : i32
    %c0_i32_0 = arith.constant 0 : i32
    %c0_i32_1 = arith.constant 0 : i32
    return %c0_i32, %c0_i32_0 : i32, i32
  }
  func.func @transform_4(%arg0: i32) -> (i32, i32) {
    %c0_i32 = arith.constant 0 : i32
    %c0_i32_0 = arith.constant 0 : i32
    %c0_i32_1 = arith.constant 0 : i32
    return %c0_i32, %c0_i32_0 : i32, i32
  }
  func.func @transform_5(%arg0: i32) -> (i32, i32) {
    %c0_i32 = arith.constant 0 : i32
    %c0_i32_0 = arith.constant 0 : i32
    %c0_i32_1 = arith.constant 0 : i32
    return %c0_i32, %c0_i32_0 : i32, i32
  }
  func.func @transform_6(%arg0: i32) -> (i32, i32) {
    %c0_i32 = arith.constant 0 : i32
    %c0_i32_0 = arith.constant 0 : i32
    %c0_i32_1 = arith.constant 0 : i32
    return %c0_i32, %c0_i32_0 : i32, i32
  }
  func.func @transform_7(%arg0: i32) -> (i32, i32) {
    %c0_i32 = arith.constant 0 : i32
    %c0_i32_0 = arith.constant 0 : i32
    return %arg0, %c0_i32 : i32, i32
  }
}

</mosaic_0001>

<bundles_post_ra>
// kernel: tpu_custom_call.1
= control target key start
LH: loop header
LB: loop body
LE: loop exit
PB: predicated region body
PF: predicated region fallthrough
CT: control target
= control target key end

     0   :  { %12 = vsyncpa [#allocation3], 0  ;;  %s1209_s0 = inlined_call_operand.vmem [shape: f32[64,16], index: 0, kind: input, shape index: {}]   ;;  %s1210_s1 = inlined_call_operand.vmem [shape: bf16[16,128], index: 1, kind: input, shape index: {}]   ;;  %s1211_s2 = inlined_call_operand.vmem [shape: f32[1,128], index: 2, kind: input, shape index: {}]   ;;  %s1212_s3 = inlined_call_operand.vmem [shape: bf16[128,128], index: 3, kind: input, shape index: {}]   ;;  %s1213_s4 = inlined_call_operand.vmem [shape: f32[1,128], index: 4, kind: input, shape index: {}]   ;;  %s1214_s5 = inlined_call_operand.hbm [shape: bf16[128,128], index: 5, kind: input, shape index: {}]   ;;  %s1215_s6 = inlined_call_operand.vmem [shape: f32[1,128], index: 6, kind: input, shape index: {}]   ;;  %s1216_s7 = inlined_call_operand.hbm [shape: f32[64,128], index: 7, kind: output, shape index: {}]  }
   0x1   :  { %13 = vsyncpa [#allocation4], 0 }
   0x2   :  { %15 = vsyncpa [#allocation4 + $0x1], 0  ;;  %s1036_s24 = smov 0   ;;  %s1038_s25 = smov 0  }
   0x3   :  { %s1040_s26 = smov 0   ;;  %s1042_s27 = smov 0  }
   0x4 LB: > { %s1057_s28 = sadd.s32 4294967295, %s988_s27   ;;  %s717_s29 = sadd.s32 4294967294, %s988_s27   ;;  %s988_s27 = sphi %s1042_s27, %s1232_s27   ;;  %s984_s26 = sphi %s1040_s26, %s1231_s26   ;;  %s980_s25 = sphi %s1038_s25, %s1230_s25   ;;  %s976_s24 = sphi %s1036_s24, %s1229_s24  }
   0x5   : > { %s1061_s30 = sadd.s32 1, %s988_s27   ;;  %s180_s8 = sadd.s32 1, %s984_s26 }
   0x6   : > { %s177_s9 = ssub.s32 %s988_s27, %s1061_s30  ;;  %p190_p0 = scmp.ne.s32.totalorder %s984_s26, %s980_s25 }
   0x7   : > { %p178_p1 = scmp.eq.s32.totalorder %s177_s9, 0  ;;  %p191_p2 = scmp.eq.s32.totalorder %s1057_s28, 1 }
   0x8   : > { %p196_p3 = scmp.ne.s32.totalorder %s980_s25, %s976_s24  ;;  %p197_p4 = scmp.eq.s32.totalorder %s717_s29, 1 }
   0x9   : > { %s1072_s10 = scalar_select %p178_p1, %s984_s26, %s180_s8  }
   0xa   : > { %p1074_p5 = por %p191_p2, %p190_p0  ;;  %p1078_p6 = por %p197_p4, %p196_p3 }
   0xb   : > { %p718_p7 = scmp.ge.s32.totalorder %s988_s27, 1  ;;  %p204_p8 = scmp.lt.s32.totalorder %s988_s27, 3 }
   0xc   : > { %s1220_s11 = scalar_select %p1074_p5, 1, 0 }
   0xd   : > { %s1221_s12 = scalar_select %p1078_p6, 1, 0 }
   0xe   : > { %p1217_p9 = scmp.eq.s32.totalorder %s1057_s28, 0  ;;  %p1085_p10 = pnand %p718_p7, %p204_p8 }
   0xf   : > { %s990_s14 = smov [#allocation2]   ;;  %s894_s19 = scalar_lea.hbm %s1214_s5, 1024 }
  0x10   : > { %s1222_s13 = scalar_select %p1085_p10, 1, 0 }
  0x11   : > { %s228_s15 = sshll.u32 %s990_s14, 4  ;;  %p829_p11 = pneg %p1085_p10  ;;  %s229_s15 = int_to_ptr.vmem [resolvable:$true] %s228_s15 }
  0x12   : > { %p895_p13 = scmp.ne.s32.totalorder %s1214_s5, %s894_s19  ;;  %p901_p3 = scmp.lt.u32.totalorder %s894_s19, %s1214_s5 }
  0x13   : > { %p1093_p12 = pnand %p1217_p9, %p829_p11 }
  0x15   : > { %p896_p0 = pneg %p1093_p12 }
  0x17   : > { %p897_p1 = pnand %p896_p0, %p895_p13 }
  0x19   : > { %p898_p2 = pneg %p897_p1 }
  0x1b   : > { %p903_p4 = pnand %p901_p3, %p898_p2 }
  0x1d   : > { %906 = shalt.err (!%p903_p4)
}
  0x1e   : > { %s907_s29 = scalar_lea.vmem %s229_s15, 1024  ;;  %p915_p9 = scmp.lt.s32.totalorder %s229_s15, %s229_s15 }
  0x1f   : > { %p908_p7 = scmp.ne.s32.totalorder %s229_s15, %s907_s29  ;;  %p916_p6 = scmp.lt.s32.totalorder %s907_s29, %s907_s29 }
  0x21   : > { %p910_p8 = pnand %p908_p7, %p896_p0  ;;  %p917_p5 = por %p916_p6, %p915_p9 }
  0x23   : > { %p911_p11 = pneg %p910_p8 }
  0x25   : > { %p918_p10 = pnand %p917_p5, %p911_p11 }
  0x27   : > { %921 = shalt.err (!%p918_p10)
}
  0x28   : > { %s991_s8 = smov 64   ;;  %s992_s9 = smov 4  }
  0x29   : > { %832 = dma.hbm_to_vmem [thread:$0]  (!%p1093_p12), %s1214_s5, 1024, %s229_s15, [#allocation3], %s991_s8, %s991_s8, %s992_s9  }
  0x2a   : > { %p1224_p13 = scmp.ne.s32.totalorder %s1222_s13, 0 }
  0x2b   : > { %p1225_p1 = scmp.eq.s32.totalorder (!%p1224_p13), %s1057_s28, 0 }
  0x2c   : > { %256 = sbr.rel (%p1224_p13) target bundleno = 738 (0x2e2), region = 48 }
  0x33   : > { %967 = dma.done.wait (%p1225_p1), [#allocation3], 1024   ;;  %p1226_p0 = pmov %p1225_p1 }
  0x34   : > { %s724_s18 = sshll.u32 %s1057_s28, 2  ;;  %v877_v0 = vld [vmem:[%s1210_s1] sm:$0xff]   ;;  %vm317_vm0 = vcmask 130048   ;;  %v879_v8 = vld [vmem:[%s1212_s3 + $0x8] sm:$0xff]   ;;  %v880_v9 = vld [vmem:[%s1212_s3 + $0x10] sm:$0xff]   ;;  %s285_s17 = sand.u32 1, %s980_s25  }
  0x35   : > { %969 = vsyncadd (%p1226_p0), [#allocation3], 4294966272  ;;  %p289_p5 = scmp.lt.s32.totalorder %s724_s18, 7  ;;  %777 = vmatprep.subr.bf16.mxu0 %v877_v0  ;;  %v878_v7 = vld [vmem:[%s1212_s3] sm:$0xff]   ;;  %v881_v10 = vld [vmem:[%s1212_s3 + $0x18] sm:$0xff]   ;;  %s753_s22 = sshll.u32 %s1057_s28, 9 }
  0x36   : > { %778 = vmatpush3.bf16.msra.mxu0 %v877_v0  ;;  %783 = vmatprep.subr.bf16.mxu1 %v878_v7  ;;  %v882_v11 = vld [vmem:[%s1212_s3 + $0x20] sm:$0xff]   ;;  %v883_v12 = vld [vmem:[%s1212_s3 + $0x28] sm:$0xff]   ;;  %v884_v13 = vld [vmem:[%s1212_s3 + $0x30] sm:$0xff]   ;;  %s1166_s23 = scalar_lea.hbm %s1216_s7, %s753_s22  ;;  %s1168_s28 = scalar_lea.sflag [#allocation4], %s285_s17 }
  0x37   : > { %s1234_s18 = smov (!%p289_p5, %s724_s18), 7  ;;  %784 = vmatpush3.bf16.msra.mxu1 %v878_v7  ;;  %v885_v14 = vld [vmem:[%s1212_s3 + $0x38] sm:$0xff]   ;;  %v886_v15 = vld [vmem:[#allocation2] sm:$0xff]   ;;  %v887_v16 = vld [vmem:[#allocation2 + $0x8] sm:$0xff]   ;;  %p1227_p9 = scmp.ne.s32.totalorder %s1220_s11, 0 }
  0x38   : > { %s725_s19 = sshll.u32 %s1234_s18, 3  ;;  %785 = vmatprep.subr.bf16.mxu1 %v879_v8  ;;  %803 = vmatprep.subr.bf16.mxu0 %v886_v15  ;;  %v888_v17 = vld [vmem:[#allocation2 + $0x10] sm:$0xff]   ;;  %v889_v18 = vld [vmem:[#allocation2 + $0x18] sm:$0xff]   ;;  %v890_v19 = vld [vmem:[#allocation2 + $0x20] sm:$0xff]   ;;  %s723_s18 = sshll.u32 %s285_s17, 5 }
  0x39   : > { %s292_s21 = scalar_lea.vmem %s1209_s0, %s725_s19  ;;  %v891_v20 = vld [vmem:[#allocation2 + $0x28] sm:$0xff]   ;;  %v726_v21 = vld [vmem:[%s1211_s2] ss:$0 sm:$0xff]  ;;  %v892_v36 = vld [vmem:[#allocation2 + $0x30] sm:$0xff]   ;;  %s287_s16 = scalar_lea.vmem [#allocation5], %s723_s18 }
  0x3a   : > { %v296_v1 = vld [vmem:[%s292_s21] sm:$0xff]  ;;  %v297_v2 = vld [vmem:[%s292_s21 + $0x8] sm:$0xff]  ;;  %v298_v3 = vld [vmem:[%s292_s21 + $0x10] sm:$0xff]  ;;  %s993_s8 = smov [#allocation5]  }
  0x3b   : > { %v300_v4 = vpack.c.bf16 %v297_v2, %v296_v1  ;;  %v299_v5 = vld [vmem:[%s292_s21 + $0x18] sm:$0xff]  ;;  %786 = vmatpush3.bf16.msra.mxu1 %v879_v8  ;;  %v730_v38 = vld [vmem:[%s1213_s4] ss:$0 sm:$0xff]  ;;  %s643_s21 = sshll.u32 %s287_s16, 4  ;;  %s926_s9 = sshll.u32 %s993_s8, 4  ;;  %s1161_s21 = int_to_ptr.vmem [resolvable:$true] %s643_s21  ;;  %s927_s9 = int_to_ptr.vmem [resolvable:$false] %s926_s9 }
  0x3c   : > { %v301_v6 = vpack.c.bf16 %v299_v5, %v298_v3  ;;  %787 = vmatprep.subr.bf16.mxu1 %v880_v9  ;;  %v893_v37 = vld [vmem:[#allocation2 + $0x38] sm:$0xff]   ;;  %v739_v53 = vld [vmem:[%s1215_s6] ss:$0 sm:$0xff]  ;;  %s922_s29 = scalar_lea.vmem %s1161_s21, 512  ;;  %s928_s14 = scalar_lea.vmem %s927_s9, 1024 }
  0x3d   : > { %779 = vmatprep.mubr.msk.bf16.mxu0 %vm317_vm0, %v300_v4  ;;  %p923_p6 = scmp.ne.s32.totalorder %s1161_s21, %s922_s29  ;;  %p929_p2 = scmp.lt.s32.totalorder %s1161_s21, %s927_s9 }
  0x3e   : > { %780 = vmatmul.mubr.msk.bf16.vlgmr.msra.gmra.mrb[0].mxu0 %vm317_vm0, %v301_v6  ;;  %p930_p3 = scmp.lt.s32.totalorder %s928_s14, %s922_s29 }
  0x3f   : > { %788 = vmatpush3.bf16.msra.mxu1 %v880_v9  ;;  %804 = vmatpush3.bf16.msra.mxu0 %v886_v15  ;;  %p924_p10 = pnand %p923_p6, %p1227_p9 }
  0x40   : > { %789 = vmatprep.subr.bf16.mxu1 %v881_v10  ;;  %805 = vmatprep.subr.bf16.mxu0 %v887_v16  ;;  %p931_p4 = por %p930_p3, %p929_p2 }
  0x41   : > { %p925_p12 = pneg %p924_p10 }
  0x43   : > { %790 = vmatpush3.bf16.msra.mxu1 %v881_v10  ;;  %806 = vmatpush3.bf16.msra.mxu0 %v887_v16  ;;  %p932_p7 = pnand %p931_p4, %p925_p12 }
  0x44   : > { %791 = vmatprep.subr.bf16.mxu1 %v882_v11  ;;  %807 = vmatprep.subr.bf16.mxu0 %v888_v17 }
  0x47   : > { %792 = vmatpush3.bf16.msra.mxu1 %v882_v11  ;;  %808 = vmatpush3.bf16.msra.mxu0 %v888_v17 }
  0x48   : > { %793 = vmatprep.subr.bf16.mxu1 %v883_v12  ;;  %809 = vmatprep.subr.bf16.mxu0 %v889_v18 }
  0x4b   : > { %794 = vmatpush3.bf16.msra.mxu1 %v883_v12  ;;  %810 = vmatpush3.bf16.msra.mxu0 %v889_v18 }
  0x4c   : > { %795 = vmatprep.subr.bf16.mxu1 %v884_v13  ;;  %811 = vmatprep.subr.bf16.mxu0 %v890_v19 }
  0x4f   : > { %796 = vmatpush3.bf16.msra.mxu1 %v884_v13  ;;  %812 = vmatpush3.bf16.msra.mxu0 %v890_v19 }
  0x50   : > { %797 = vmatprep.subr.bf16.mxu1 %v885_v14  ;;  %813 = vmatprep.subr.bf16.mxu0 %v891_v20 }
  0x53   : > { %798 = vmatpush3.bf16.msra.mxu1 %v885_v14  ;;  %814 = vmatpush3.bf16.msra.mxu0 %v891_v20 }
  0x54   : > { %815 = vmatprep.subr.bf16.mxu0 %v892_v36 }
  0x57   : > { %816 = vmatpush3.bf16.msra.mxu0 %v892_v36 }
  0x58   : > { %817 = vmatprep.subr.bf16.mxu0 %v893_v37 }
  0x5b   : > { %818 = vmatpush3.bf16.msra.mxu0 %v893_v37 }
 0x111   : > { %v781_v22 = vpop.f32.mrb[0].mxu0 }
 0x112   : > { %v367_v23 = vadd.f32 %v781_v22, %v726_v21  ;;  %v358_v24 = vpop.f32.mrb[1].mxu0 }
 0x113   : > { %v359_v25 = vadd.f32 %v726_v21, %v358_v24  ;;  %v782_v26 = vpop.f32.mrb[2].mxu0 }
 0x114   : > { %v370_v27 = vadd.f32 %v782_v26, %v726_v21  ;;  %v361_v28 = vpop.f32.mrb[3].mxu0  ;;  %v375_v30 = vmax.f32 %v367_v23, 0.0 }
 0x115   : > { %v362_v29 = vadd.f32 %v726_v21, %v361_v28  ;;  %v373_v32 = vmax.f32 %v359_v25, 0.0 }
 0x116   : > { %v376_v31 = vmax.f32 %v370_v27, 0.0 }
 0x117   : > { %v374_v33 = vmax.f32 %v362_v29, 0.0 }
 0x118   : > { %v378_v34 = vpack.c.bf16 %v376_v31, %v375_v30 }
 0x119   : > { %v377_v35 = vpack.c.bf16 %v374_v33, %v373_v32 }
 0x11b   : > { %799 = vmatprep.mubr.bf16.mxu1 %v377_v35 }
 0x11c   : > { %800 = vmatmul.mubr.bf16.vlgmr.msra.gmra.mrb[0].mxu1 %v378_v34 }
 0x1ef   : > { %v801_v39 = vpop.f32.mrb[0].mxu1 }
 0x1f0   : > { %v493_v40 = vadd.f32 %v801_v39, %v730_v38  ;;  %v484_v41 = vpop.f32.mrb[1].mxu1 }
 0x1f1   : > { %v485_v42 = vadd.f32 %v730_v38, %v484_v41  ;;  %v802_v43 = vpop.f32.mrb[2].mxu1 }
 0x1f2   : > { %v496_v44 = vadd.f32 %v802_v43, %v730_v38  ;;  %v487_v45 = vpop.f32.mrb[3].mxu1  ;;  %v501_v47 = vmax.f32 %v493_v40, 0.0 }
 0x1f3   : > { %v488_v46 = vadd.f32 %v730_v38, %v487_v45  ;;  %v499_v49 = vmax.f32 %v485_v42, 0.0 }
 0x1f4   : > { %v502_v48 = vmax.f32 %v496_v44, 0.0 }
 0x1f5   : > { %v500_v50 = vmax.f32 %v488_v46, 0.0 }
 0x1f6   : > { %v504_v51 = vpack.c.bf16 %v502_v48, %v501_v47 }
 0x1f7   : > { %v503_v52 = vpack.c.bf16 %v500_v50, %v499_v49 }
 0x1f9   : > { %819 = vmatprep.mubr.bf16.mxu0 %v503_v52 }
 0x1fa   : > { %820 = vmatmul.mubr.bf16.vlgmr.msra.gmra.mrb[4].mxu0 %v504_v51 }
 0x2cd   : > { %v821_v54 = vpop.f32.mrb[4].mxu0 }
 0x2ce   : > { %v619_v55 = vadd.f32 %v821_v54, %v739_v53  ;;  %v610_v56 = vpop.f32.mrb[5].mxu0 }
 0x2cf   : > { %v611_v57 = vadd.f32 %v739_v53, %v610_v56  ;;  %v822_v58 = vpop.f32.mrb[6].mxu0 }
 0x2d0   : > { %627 = vst [vmem:[%s287_s16 + $0x10] sm:$0xff] %v619_v55  ;;  %v622_v59 = vadd.f32 %v822_v58, %v739_v53  ;;  %v613_v60 = vpop.f32.mrb[7].mxu0 }
 0x2d1   : > { %625 = vst [vmem:[%s287_s16] sm:$0xff] %v611_v57  ;;  %v614_v61 = vadd.f32 %v739_v53, %v613_v60 }
 0x2d2   : > { %628 = vst [vmem:[%s287_s16 + $0x18] sm:$0xff] %v622_v59 }
 0x2d3   : > { %626 = vst [vmem:[%s287_s16 + $0x8] sm:$0xff] %v614_v61 }
 0x2d4   : > { %935 = shalt.err (!%p932_p7)
}
 0x2d5   : > { %s936_s17 = scalar_lea.hbm %s1166_s23, 512  ;;  %s940_s20 = scalar_lea.hbm %s1216_s7, 1024 }
 0x2d6   : > { %p937_p8 = scmp.ne.s32.totalorder %s1166_s23, %s936_s17  ;;  %p941_p1 = scmp.lt.u32.totalorder %s1166_s23, %s1216_s7 }
 0x2d7   : > { %p942_p0 = scmp.lt.u32.totalorder %s940_s20, %s936_s17  ;;  %p944_p6 = scmp.lt.u32.totalorder %s936_s17, %s1166_s23 }
 0x2d8   : > { %p938_p11 = pnand %p937_p8, %p1227_p9 }
 0x2d9   : > { %p943_p5 = por %p942_p0, %p941_p1 }
 0x2da   : > { %p939_p13 = pneg %p938_p11 }
 0x2db   : > { %p945_p10 = por %p944_p6, %p943_p5 }
 0x2dd   : > { %p946_p12 = pnand %p945_p10, %p939_p13 }
 0x2df   : > { %949 = shalt.err (!%p946_p12)
}
 0x2e0   : > { %s994_s15 = smov 128   ;;  %s995_s13 = smov 8  }
 0x2e1   : > { %827 = dma.vmem_to_hbm [thread:$0]  (%p1227_p9), %s1161_s21, 512, %s1166_s23, %s1168_s28, %s994_s15, %s994_s15, %s995_s13  }
 0x2e2 PF: > { %p839_p2 = scmp.ge.s32.totalorder %s988_s27, 2  ;;  %s658_s29 = sand.u32 1, %s976_s24  }
 0x2e3   : > { %p1228_p3 = scmp.ne.s32.totalorder %s1221_s12, 0  ;;  %s659_s8 = scalar_lea.sflag [#allocation4], %s658_s29 }
 0x2e5   : > { %p834_p4 = pnand %p839_p2, %p1228_p3 }
 0x2e7   : > { %971 = dma.done.wait (!%p834_p4), %s659_s8, 512  }
 0x2e8   : > { %973 = vsyncadd (!%p834_p4), %s659_s8, 4294966784  ;;  %p18_p7 = scmp.ge.s32.totalorder %s1061_s30, 4   ;;  %s1229_s24 = smov %s980_s25 }
 0x2e9   : > { %s1230_s25 = smov %s984_s26  ;;  %s1231_s26 = smov %s1072_s10 }
 0x2ea   : > { %s1232_s27 = smov %s1061_s30  ;;  %20 = sbr.rel (!%p18_p7) target bundleno = 4 (0x4), region = 88 }
 0x2f1   :  { %664 = vsyncpa [#allocation3], 1 }
 0x2f2   :  { %666 = vsyncpa [#allocation3 + $0x1], 1 }
 0x2f3   :  { %667 = vsyncpa [#allocation4], 1 }
 0x2f4   :  { %669 = vsyncpa [#allocation4 + $0x1], 1 }

</bundles_post_ra>
